<compile_context>
chip_gen: v5e
topology: v5e:2x2
jax: 0.10.0
libtpu: 0.0.40
codegen_flags: <defaults>
</compile_context>

<pallas_src>
import functools

import jax
import jax.numpy as jnp
from jax import lax
from jax.experimental import pallas as pl
from jax.experimental.pallas import tpu as pltpu

HIDDEN = 32
INPUT = 1      # kernel exploits INPUT == 1 (input projection = scalar * weight row)
LAYERS = 2     # fused into the 2H-wide recurrence
OUTPUT = 1


def _rnn_kernel(x_ref, w0_ref, b0row_ref, brow_ref, wbig_ref, wfc_ref, bfc_ref,
                out_ref, *, seq_len, batch, matmul_dtype, unroll):
    # x_ref:     (T*B,) f32 in SMEM, x_flat[t*B + b] = x[b, t, 0]
    # w0_ref:    (1, 2H)  [W_ih0 row, 0]            (valid because INPUT == 1)
    # b0row_ref: (1, 2H)  [b_ih0 + b_hh0, 0]        (step-0 bias; layer-1 half must be 0)
    # brow_ref:  (1, 2H)  [b_ih0 + b_hh0, b_ih1 + b_hh1]
    # wbig_ref:  (2H, 2H) fused recurrent weights [[Whh0, Wih1],[0, Whh1]]
    # wfc_ref:   (2H, OUT) final Linear weight, zero-padded on the h0 half
    # bfc_ref:   (1, OUT)
    B, T = batch, seq_len

    # Hoist loop-invariant loads and the one-time down-cast of the recurrent weight.
    w0row = w0_ref[...]                                   # (1, 2H) f32
    brow = brow_ref[...]                                  # (1, 2H) f32
    wbig = wbig_ref[...].astype(matmul_dtype)             # (2H, 2H)

    def xterm(i):
        # Per-step layer-0 input projection, built from scalar SMEM loads + VPU
        # broadcast-multiplies (right half is exactly 0).  VPU/scalar slots are idle
        # while the serial MXU matmul is in flight, so this is free filler.
        rows = [x_ref[i * B + b] * w0row for b in range(B)]
        return jnp.concatenate(rows, axis=0)              # (B, 2H) f32

    # Step 0: initial hidden state is zero -> hcat = tanh(A[0]) = [h0(0), tanh(0)=0].
    hcat = jnp.tanh(xterm(0) + b0row_ref[...])            # (B, 2H) f32, register-carried

    def step(i, hcat):
        z = jnp.dot(hcat.astype(matmul_dtype), wbig,
                    preferred_element_type=jnp.float32)
        return jnp.tanh(z + xterm(i) + brow)               # [h0(i), h1(i-1)]

    hcat = lax.fori_loop(1, T, step, hcat, unroll=unroll)  # after: [h0(T-1), h1(T-2)]

    # Drain step: produces h1(T-1) in the right half (left half is garbage, masked
    # out by the zero-padded wfc).
    z = jnp.dot(hcat.astype(matmul_dtype), wbig, preferred_element_type=jnp.float32)
    hcat = jnp.tanh(z + brow)

    # Final FC in f32 (one-off, not on the repeated path).
    out_ref[...] = (jnp.dot(hcat, wfc_ref[...], preferred_element_type=jnp.float32)
                    + bfc_ref[...])


def rnn_forward(x, params, *, matmul_dtype=jnp.bfloat16):
    """x: (B, T, INPUT) float32, batch_first (PyTorch convention)."""
    (wih0, whh0, bih0, bhh0,
     wih1, whh1, bih1, bhh1,
     wfc, bfc) = params
    B, T, _ = x.shape
    H = HIDDEN
    f32 = jnp.float32

    # ---- T-independent weight packing (each recurrent step = ONE fused matmul) ----
    # hcat = [h0, h1] (B, 2H);  z = hcat @ W_big:
    #   z[:, :H] = h0 @ W_hh0                  (layer-0 recurrent term for step t+1)
    #   z[:, H:] = h0 @ W_ih1 + h1 @ W_hh1     (layer-1 pre-activation for step t)
    wbig = jnp.zeros((2 * H, 2 * H), f32)
    wbig = wbig.at[:H, :H].set(whh0)
    wbig = wbig.at[:H, H:].set(wih1)
    wbig = wbig.at[H:, H:].set(whh1)

    b0 = (bih0 + bhh0).reshape(1, H)
    b1 = (bih1 + bhh1).reshape(1, H)
    zeros_h = jnp.zeros((1, H), f32)
    w0row = jnp.concatenate([wih0.reshape(1, H), zeros_h], axis=1)   # (1, 2H), INPUT==1
    b0row = jnp.concatenate([b0, zeros_h], axis=1)                   # step-0 bias
    brow = jnp.concatenate([b0, b1], axis=1)                         # steady-state bias
    wfc_pad = jnp.zeros((2 * H, OUTPUT), f32).at[H:, :].set(wfc)

    # Raw input, time-major, flattened into SMEM: x_flat[t*B + b] = x[b, t, 0].
    x_flat = jnp.transpose(x[:, :, 0], (1, 0)).reshape(T * B)

    kern = functools.partial(
        _rnn_kernel, seq_len=T, batch=B, matmul_dtype=matmul_dtype,
        unroll=min(8, max(T - 1, 1)))

    smem = pl.BlockSpec(memory_space=pltpu.MemorySpace.SMEM)
    vmem = pl.BlockSpec(memory_space=pltpu.MemorySpace.VMEM)
    return pl.pallas_call(
        kern,
        out_shape=jax.ShapeDtypeStruct((B, OUTPUT), f32),
        in_specs=[smem, vmem, vmem, vmem, vmem, vmem, vmem],
        out_specs=vmem,
    )(x_flat, w0row, b0row, brow, wbig, wfc_pad, bfc)


def init_params(key):
    """Deterministic init matching nn.RNN/nn.Linear shapes (uniform +-1/sqrt(H)).
    Weights are stored pre-transposed: (in_features, out_features)."""
    bound = 1.0 / jnp.sqrt(jnp.float32(HIDDEN))
    keys = jax.random.split(key, 10)
    u = lambda k, shape: jax.random.uniform(
        k, shape, jnp.float32, minval=-bound, maxval=bound)
    wih0 = u(keys[0], (INPUT, HIDDEN))     # layer0 W_ih^T
    whh0 = u(keys[1], (HIDDEN, HIDDEN))    # layer0 W_hh^T
    bih0 = u(keys[2], (1, HIDDEN))
    bhh0 = u(keys[3], (1, HIDDEN))
    wih1 = u(keys[4], (HIDDEN, HIDDEN))    # layer1 W_ih^T
    whh1 = u(keys[5], (HIDDEN, HIDDEN))    # layer1 W_hh^T
    bih1 = u(keys[6], (1, HIDDEN))
    bhh1 = u(keys[7], (1, HIDDEN))
    wfc = u(keys[8], (HIDDEN, OUTPUT))     # fc weight^T
    bfc = u(keys[9], (1, OUTPUT))
    return (wih0, whh0, bih0, bhh0, wih1, whh1, bih1, bhh1, wfc, bfc)


def rnn_reference(x, params):
    """Plain-JAX reference of the PyTorch forward, for verification."""
    (wih0, whh0, bih0, bhh0,
     wih1, whh1, bih1, bhh1,
     wfc, bfc) = params
    B, T, _ = x.shape
    h0 = jnp.zeros((B, HIDDEN), jnp.float32)
    h1 = jnp.zeros((B, HIDDEN), jnp.float32)
    for t in range(T):
        xt = x[:, t, :]
        h0 = jnp.tanh(xt @ wih0 + bih0 + h0 @ whh0 + bhh0)
        h1 = jnp.tanh(h0 @ wih1 + bih1 + h1 @ whh1 + bhh1)
    return h1 @ wfc + bfc


if __name__ == "__main__":
    key = jax.random.PRNGKey(0)
    pkey, xkey = jax.random.split(key)
    params = init_params(pkey)

    B, T = 2, 8
    x = jax.random.normal(xkey, (B, T, INPUT), dtype=jnp.float32)

    ref = rnn_reference(x, params)

    # Exactness check: f32 matmul operands must match the reference tightly.
    fwd_f32 = jax.jit(functools.partial(rnn_forward, matmul_dtype=jnp.float32))
    out_f32 = jax.block_until_ready(fwd_f32(x, params))
    assert out_f32.shape == (B, OUTPUT)
    assert jnp.allclose(out_f32, ref, atol=1e-5, rtol=1e-5), (out_f32, ref)

    # Performance default: bf16 matmul operands (f32 accumulation / f32 tanh).
    # Tolerance is looser because hcat is re-quantized each of the T serial steps.
    fwd_bf16 = jax.jit(functools.partial(rnn_forward, matmul_dtype=jnp.bfloat16))
    out_bf16 = jax.block_until_ready(fwd_bf16(x, params))
    assert out_bf16.shape == (B, OUTPUT)
    assert jnp.allclose(out_bf16, ref, atol=2e-2, rtol=2e-2), (out_bf16, ref)

    print("KERNEL_OK")
</pallas_src>

<mosaic_0001>
module attributes {stable_mosaic.version = 11 : i64} {
  func.func @_rnn_kernel(%arg0: memref<16xf32, #tpu.memory_space<smem>>, %arg1: memref<1x64xf32, #tpu.memory_space<vmem>>, %arg2: memref<1x64xf32, #tpu.memory_space<vmem>>, %arg3: memref<1x64xf32, #tpu.memory_space<vmem>>, %arg4: memref<64x64xf32, #tpu.memory_space<vmem>>, %arg5: memref<64x1xf32, #tpu.memory_space<vmem>>, %arg6: memref<1x1xf32, #tpu.memory_space<vmem>>, %arg7: memref<2x1xf32, #tpu.memory_space<vmem>>) attributes {dimension_semantics = [], scalar_prefetch = 0 : i64, scratch_operands = 0 : i64, tpu.core_type = #tpu.core_type<tc>} {
    %c0 = arith.constant 0 : index
    %c0_0 = arith.constant 0 : index
    %0 = vector.load %arg1[%c0, %c0_0] : memref<1x64xf32, #tpu.memory_space<vmem>>, vector<1x64xf32>
    %c0_1 = arith.constant 0 : index
    %c0_2 = arith.constant 0 : index
    %1 = vector.load %arg3[%c0_1, %c0_2] : memref<1x64xf32, #tpu.memory_space<vmem>>, vector<1x64xf32>
    %c0_3 = arith.constant 0 : index
    %c0_4 = arith.constant 0 : index
    %2 = vector.load %arg4[%c0_3, %c0_4] : memref<64x64xf32, #tpu.memory_space<vmem>>, vector<64x64xf32>
    %c0_5 = arith.constant 0 : index
    %3 = memref.load %arg0[%c0_5] : memref<16xf32, #tpu.memory_space<smem>>
    %4 = vector.broadcast %3 : f32 to vector<1x64xf32>
    %5 = arith.mulf %4, %0 : vector<1x64xf32>
    %c1 = arith.constant 1 : index
    %6 = memref.load %arg0[%c1] : memref<16xf32, #tpu.memory_space<smem>>
    %7 = vector.broadcast %6 : f32 to vector<1x64xf32>
    %8 = arith.mulf %7, %0 : vector<1x64xf32>
    %9 = tpu.concatenate %5, %8 in 0 : vector<1x64xf32>, vector<1x64xf32> -> vector<2x64xf32>
    %c0_6 = arith.constant 0 : index
    %c0_7 = arith.constant 0 : index
    %10 = vector.load %arg2[%c0_6, %c0_7] : memref<1x64xf32, #tpu.memory_space<vmem>>, vector<1x64xf32>
    %11 = vector.broadcast %10 : vector<1x64xf32> to vector<2x64xf32>
    %12 = arith.addf %9, %11 : vector<2x64xf32>
    %13 = math.tanh %12 : vector<2x64xf32>
    %c1_i32 = arith.constant 1 : i32
    %cst = arith.constant dense<0.000000e+00> : vector<2x64xf32>
    %14 = tpu.matmul %13, %2, %cst {dimension_numbers = #tpu.dot_dimension_numbers<[1], [0], [0], [1], [0, 0, 1, 1], [], []>} : vector<2x64xf32>, vector<64x64xf32>, vector<2x64xf32> -> vector<2x64xf32>
    %c2_i32 = arith.constant 2 : i32
    %15 = arith.muli %c1_i32, %c2_i32 : i32
    %c0_i32 = arith.constant 0 : i32
    %16 = arith.addi %15, %c0_i32 : i32
    %17 = arith.index_cast %16 : i32 to index
    %18 = memref.load %arg0[%17] : memref<16xf32, #tpu.memory_space<smem>>
    %19 = vector.broadcast %18 : f32 to vector<1x64xf32>
    %20 = arith.mulf %19, %0 : vector<1x64xf32>
    %c2_i32_8 = arith.constant 2 : i32
    %21 = arith.muli %c1_i32, %c2_i32_8 : i32
    %c1_i32_9 = arith.constant 1 : i32
    %22 = arith.addi %21, %c1_i32_9 : i32
    %23 = arith.index_cast %22 : i32 to index
    %24 = memref.load %arg0[%23] : memref<16xf32, #tpu.memory_space<smem>>
    %25 = vector.broadcast %24 : f32 to vector<1x64xf32>
    %26 = arith.mulf %25, %0 : vector<1x64xf32>
    %27 = tpu.concatenate %20, %26 in 0 : vector<1x64xf32>, vector<1x64xf32> -> vector<2x64xf32>
    %28 = arith.addf %14, %27 : vector<2x64xf32>
    %29 = vector.broadcast %1 : vector<1x64xf32> to vector<2x64xf32>
    %30 = arith.addf %28, %29 : vector<2x64xf32>
    %31 = math.tanh %30 : vector<2x64xf32>
    %c2_i32_10 = arith.constant 2 : i32
    %cst_11 = arith.constant dense<0.000000e+00> : vector<2x64xf32>
    %32 = tpu.matmul %31, %2, %cst_11 {dimension_numbers = #tpu.dot_dimension_numbers<[1], [0], [0], [1], [0, 0, 1, 1], [], []>} : vector<2x64xf32>, vector<64x64xf32>, vector<2x64xf32> -> vector<2x64xf32>
    %c2_i32_12 = arith.constant 2 : i32
    %33 = arith.muli %c2_i32_10, %c2_i32_12 : i32
    %c0_i32_13 = arith.constant 0 : i32
    %34 = arith.addi %33, %c0_i32_13 : i32
    %35 = arith.index_cast %34 : i32 to index
    %36 = memref.load %arg0[%35] : memref<16xf32, #tpu.memory_space<smem>>
    %37 = vector.broadcast %36 : f32 to vector<1x64xf32>
    %38 = arith.mulf %37, %0 : vector<1x64xf32>
    %c2_i32_14 = arith.constant 2 : i32
    %39 = arith.muli %c2_i32_10, %c2_i32_14 : i32
    %c1_i32_15 = arith.constant 1 : i32
    %40 = arith.addi %39, %c1_i32_15 : i32
    %41 = arith.index_cast %40 : i32 to index
    %42 = memref.load %arg0[%41] : memref<16xf32, #tpu.memory_space<smem>>
    %43 = vector.broadcast %42 : f32 to vector<1x64xf32>
    %44 = arith.mulf %43, %0 : vector<1x64xf32>
    %45 = tpu.concatenate %38, %44 in 0 : vector<1x64xf32>, vector<1x64xf32> -> vector<2x64xf32>
    %46 = arith.addf %32, %45 : vector<2x64xf32>
    %47 = vector.broadcast %1 : vector<1x64xf32> to vector<2x64xf32>
    %48 = arith.addf %46, %47 : vector<2x64xf32>
    %49 = math.tanh %48 : vector<2x64xf32>
    %c3_i32 = arith.constant 3 : i32
    %cst_16 = arith.constant dense<0.000000e+00> : vector<2x64xf32>
    %50 = tpu.matmul %49, %2, %cst_16 {dimension_numbers = #tpu.dot_dimension_numbers<[1], [0], [0], [1], [0, 0, 1, 1], [], []>} : vector<2x64xf32>, vector<64x64xf32>, vector<2x64xf32> -> vector<2x64xf32>
    %c2_i32_17 = arith.constant 2 : i32
    %51 = arith.muli %c3_i32, %c2_i32_17 : i32
    %c0_i32_18 = arith.constant 0 : i32
    %52 = arith.addi %51, %c0_i32_18 : i32
    %53 = arith.index_cast %52 : i32 to index
    %54 = memref.load %arg0[%53] : memref<16xf32, #tpu.memory_space<smem>>
    %55 = vector.broadcast %54 : f32 to vector<1x64xf32>
    %56 = arith.mulf %55, %0 : vector<1x64xf32>
    %c2_i32_19 = arith.constant 2 : i32
    %57 = arith.muli %c3_i32, %c2_i32_19 : i32
    %c1_i32_20 = arith.constant 1 : i32
    %58 = arith.addi %57, %c1_i32_20 : i32
    %59 = arith.index_cast %58 : i32 to index
    %60 = memref.load %arg0[%59] : memref<16xf32, #tpu.memory_space<smem>>
    %61 = vector.broadcast %60 : f32 to vector<1x64xf32>
    %62 = arith.mulf %61, %0 : vector<1x64xf32>
    %63 = tpu.concatenate %56, %62 in 0 : vector<1x64xf32>, vector<1x64xf32> -> vector<2x64xf32>
    %64 = arith.addf %50, %63 : vector<2x64xf32>
    %65 = vector.broadcast %1 : vector<1x64xf32> to vector<2x64xf32>
    %66 = arith.addf %64, %65 : vector<2x64xf32>
    %67 = math.tanh %66 : vector<2x64xf32>
    %c4_i32 = arith.constant 4 : i32
    %cst_21 = arith.constant dense<0.000000e+00> : vector<2x64xf32>
    %68 = tpu.matmul %67, %2, %cst_21 {dimension_numbers = #tpu.dot_dimension_numbers<[1], [0], [0], [1], [0, 0, 1, 1], [], []>} : vector<2x64xf32>, vector<64x64xf32>, vector<2x64xf32> -> vector<2x64xf32>
    %c2_i32_22 = arith.constant 2 : i32
    %69 = arith.muli %c4_i32, %c2_i32_22 : i32
    %c0_i32_23 = arith.constant 0 : i32
    %70 = arith.addi %69, %c0_i32_23 : i32
    %71 = arith.index_cast %70 : i32 to index
    %72 = memref.load %arg0[%71] : memref<16xf32, #tpu.memory_space<smem>>
    %73 = vector.broadcast %72 : f32 to vector<1x64xf32>
    %74 = arith.mulf %73, %0 : vector<1x64xf32>
    %c2_i32_24 = arith.constant 2 : i32
    %75 = arith.muli %c4_i32, %c2_i32_24 : i32
    %c1_i32_25 = arith.constant 1 : i32
    %76 = arith.addi %75, %c1_i32_25 : i32
    %77 = arith.index_cast %76 : i32 to index
    %78 = memref.load %arg0[%77] : memref<16xf32, #tpu.memory_space<smem>>
    %79 = vector.broadcast %78 : f32 to vector<1x64xf32>
    %80 = arith.mulf %79, %0 : vector<1x64xf32>
    %81 = tpu.concatenate %74, %80 in 0 : vector<1x64xf32>, vector<1x64xf32> -> vector<2x64xf32>
    %82 = arith.addf %68, %81 : vector<2x64xf32>
    %83 = vector.broadcast %1 : vector<1x64xf32> to vector<2x64xf32>
    %84 = arith.addf %82, %83 : vector<2x64xf32>
    %85 = math.tanh %84 : vector<2x64xf32>
    %c5_i32 = arith.constant 5 : i32
    %cst_26 = arith.constant dense<0.000000e+00> : vector<2x64xf32>
    %86 = tpu.matmul %85, %2, %cst_26 {dimension_numbers = #tpu.dot_dimension_numbers<[1], [0], [0], [1], [0, 0, 1, 1], [], []>} : vector<2x64xf32>, vector<64x64xf32>, vector<2x64xf32> -> vector<2x64xf32>
    %c2_i32_27 = arith.constant 2 : i32
    %87 = arith.muli %c5_i32, %c2_i32_27 : i32
    %c0_i32_28 = arith.constant 0 : i32
    %88 = arith.addi %87, %c0_i32_28 : i32
    %89 = arith.index_cast %88 : i32 to index
    %90 = memref.load %arg0[%89] : memref<16xf32, #tpu.memory_space<smem>>
    %91 = vector.broadcast %90 : f32 to vector<1x64xf32>
    %92 = arith.mulf %91, %0 : vector<1x64xf32>
    %c2_i32_29 = arith.constant 2 : i32
    %93 = arith.muli %c5_i32, %c2_i32_29 : i32
    %c1_i32_30 = arith.constant 1 : i32
    %94 = arith.addi %93, %c1_i32_30 : i32
    %95 = arith.index_cast %94 : i32 to index
    %96 = memref.load %arg0[%95] : memref<16xf32, #tpu.memory_space<smem>>
    %97 = vector.broadcast %96 : f32 to vector<1x64xf32>
    %98 = arith.mulf %97, %0 : vector<1x64xf32>
    %99 = tpu.concatenate %92, %98 in 0 : vector<1x64xf32>, vector<1x64xf32> -> vector<2x64xf32>
    %100 = arith.addf %86, %99 : vector<2x64xf32>
    %101 = vector.broadcast %1 : vector<1x64xf32> to vector<2x64xf32>
    %102 = arith.addf %100, %101 : vector<2x64xf32>
    %103 = math.tanh %102 : vector<2x64xf32>
    %c6_i32 = arith.constant 6 : i32
    %cst_31 = arith.constant dense<0.000000e+00> : vector<2x64xf32>
    %104 = tpu.matmul %103, %2, %cst_31 {dimension_numbers = #tpu.dot_dimension_numbers<[1], [0], [0], [1], [0, 0, 1, 1], [], []>} : vector<2x64xf32>, vector<64x64xf32>, vector<2x64xf32> -> vector<2x64xf32>
    %c2_i32_32 = arith.constant 2 : i32
    %105 = arith.muli %c6_i32, %c2_i32_32 : i32
    %c0_i32_33 = arith.constant 0 : i32
    %106 = arith.addi %105, %c0_i32_33 : i32
    %107 = arith.index_cast %106 : i32 to index
    %108 = memref.load %arg0[%107] : memref<16xf32, #tpu.memory_space<smem>>
    %109 = vector.broadcast %108 : f32 to vector<1x64xf32>
    %110 = arith.mulf %109, %0 : vector<1x64xf32>
    %c2_i32_34 = arith.constant 2 : i32
    %111 = arith.muli %c6_i32, %c2_i32_34 : i32
    %c1_i32_35 = arith.constant 1 : i32
    %112 = arith.addi %111, %c1_i32_35 : i32
    %113 = arith.index_cast %112 : i32 to index
    %114 = memref.load %arg0[%113] : memref<16xf32, #tpu.memory_space<smem>>
    %115 = vector.broadcast %114 : f32 to vector<1x64xf32>
    %116 = arith.mulf %115, %0 : vector<1x64xf32>
    %117 = tpu.concatenate %110, %116 in 0 : vector<1x64xf32>, vector<1x64xf32> -> vector<2x64xf32>
    %118 = arith.addf %104, %117 : vector<2x64xf32>
    %119 = vector.broadcast %1 : vector<1x64xf32> to vector<2x64xf32>
    %120 = arith.addf %118, %119 : vector<2x64xf32>
    %121 = math.tanh %120 : vector<2x64xf32>
    %c7_i32 = arith.constant 7 : i32
    %cst_36 = arith.constant dense<0.000000e+00> : vector<2x64xf32>
    %122 = tpu.matmul %121, %2, %cst_36 {dimension_numbers = #tpu.dot_dimension_numbers<[1], [0], [0], [1], [0, 0, 1, 1], [], []>} : vector<2x64xf32>, vector<64x64xf32>, vector<2x64xf32> -> vector<2x64xf32>
    %c2_i32_37 = arith.constant 2 : i32
    %123 = arith.muli %c7_i32, %c2_i32_37 : i32
    %c0_i32_38 = arith.constant 0 : i32
    %124 = arith.addi %123, %c0_i32_38 : i32
    %125 = arith.index_cast %124 : i32 to index
    %126 = memref.load %arg0[%125] : memref<16xf32, #tpu.memory_space<smem>>
    %127 = vector.broadcast %126 : f32 to vector<1x64xf32>
    %128 = arith.mulf %127, %0 : vector<1x64xf32>
    %c2_i32_39 = arith.constant 2 : i32
    %129 = arith.muli %c7_i32, %c2_i32_39 : i32
    %c1_i32_40 = arith.constant 1 : i32
    %130 = arith.addi %129, %c1_i32_40 : i32
    %131 = arith.index_cast %130 : i32 to index
    %132 = memref.load %arg0[%131] : memref<16xf32, #tpu.memory_space<smem>>
    %133 = vector.broadcast %132 : f32 to vector<1x64xf32>
    %134 = arith.mulf %133, %0 : vector<1x64xf32>
    %135 = tpu.concatenate %128, %134 in 0 : vector<1x64xf32>, vector<1x64xf32> -> vector<2x64xf32>
    %136 = arith.addf %122, %135 : vector<2x64xf32>
    %137 = vector.broadcast %1 : vector<1x64xf32> to vector<2x64xf32>
    %138 = arith.addf %136, %137 : vector<2x64xf32>
    %139 = math.tanh %138 : vector<2x64xf32>
    %c7_i32_41 = arith.constant 7 : i32
    %cst_42 = arith.constant dense<0.000000e+00> : vector<2x64xf32>
    %140 = tpu.matmul %139, %2, %cst_42 {dimension_numbers = #tpu.dot_dimension_numbers<[1], [0], [0], [1], [0, 0, 1, 1], [], []>} : vector<2x64xf32>, vector<64x64xf32>, vector<2x64xf32> -> vector<2x64xf32>
    %141 = vector.broadcast %1 : vector<1x64xf32> to vector<2x64xf32>
    %142 = arith.addf %140, %141 : vector<2x64xf32>
    %143 = math.tanh %142 : vector<2x64xf32>
    %c0_43 = arith.constant 0 : index
    %c0_44 = arith.constant 0 : index
    %144 = vector.load %arg5[%c0_43, %c0_44] : memref<64x1xf32, #tpu.memory_space<vmem>>, vector<64x1xf32>
    %cst_45 = arith.constant dense<0.000000e+00> : vector<2x1xf32>
    %145 = tpu.matmul %143, %144, %cst_45 {dimension_numbers = #tpu.dot_dimension_numbers<[1], [0], [0], [1], [0, 0, 1, 1], [], []>} : vector<2x64xf32>, vector<64x1xf32>, vector<2x1xf32> -> vector<2x1xf32>
    %c0_46 = arith.constant 0 : index
    %c0_47 = arith.constant 0 : index
    %146 = vector.load %arg6[%c0_46, %c0_47] : memref<1x1xf32, #tpu.memory_space<vmem>>, vector<1x1xf32>
    %147 = vector.broadcast %146 : vector<1x1xf32> to vector<2x1xf32>
    %148 = arith.addf %145, %147 : vector<2x1xf32>
    %c0_48 = arith.constant 0 : index
    %c0_49 = arith.constant 0 : index
    %149 = vector.load %arg7[%c0_48, %c0_49] : memref<2x1xf32, #tpu.memory_space<vmem>>, vector<2x1xf32>
    tpu.vector_store %arg7[%c0_48, %c0_49], %148 {strides = array<i32>} : memref<2x1xf32, #tpu.memory_space<vmem>>, vector<2x1xf32>,
    return
  }
}

</mosaic_0001>

<bundles_post_ra>
// kernel: rnn_forward.1
= control target key start
LH: loop header
LB: loop body
LE: loop exit
PB: predicated region body
PF: predicated region fallthrough
CT: control target
= control target key end

     0   :  { %s605_s0 = inlined_call_operand.vmem [shape: f32[16], index: 0, kind: input, shape index: {}]   ;;  %s606_s1 = inlined_call_operand.vmem [shape: f32[1,64], index: 1, kind: input, shape index: {}]   ;;  %s607_s2 = inlined_call_operand.vmem [shape: f32[1,64], index: 2, kind: input, shape index: {}]   ;;  %s608_s3 = inlined_call_operand.vmem [shape: f32[1,64], index: 3, kind: input, shape index: {}]   ;;  %s609_s4 = inlined_call_operand.vmem [shape: f32[64,64], index: 4, kind: input, shape index: {}]   ;;  %s610_s5 = inlined_call_operand.vmem [shape: f32[64,1], index: 5, kind: input, shape index: {}]   ;;  %s611_s6 = inlined_call_operand.<no memory space> [shape: f32[1,1], index: 6, kind: input, shape index: {}]   ;;  %s612_s7 = inlined_call_operand.vmem [shape: f32[2,1], index: 7, kind: output, shape index: {}]  }
   0x1   :  { %v12_v0 = vstv %s611_s6 }
   0x2   :  { %13 = vst [vmem:[#allocation2] sm:$0x1] %v12_v0 }
   0x3   :  { %14 = vsyncpa [#allocation4], 0  ;;  %s20_s28 = sshll.u32 %s605_s0, 4  ;;  %s443_s29 = smov [#allocation3]   ;;  %s21_s28 = int_to_ptr.vmem [resolvable:$true] %s20_s28 }
   0x4   :  { %23 = dma.vmem_to_smem %s21_s28, 16, %s443_s29, [#allocation4]  }
   0x5   :  { %441 = dma.done.wait [#allocation4], 16  }
   0x6   :  { %442 = vsyncadd [#allocation4], 4294967280 }
   0x7   :  { %40 = sfence }
   0x8   :  { %v50_v1 = vld [vmem:[%s609_s4 + $0x38] sm:$0xff]  ;;  %v49_v2 = vld [vmem:[%s609_s4 + $0x30] sm:$0xff]  ;;  %s51_s6 = sld [smem:[#allocation3]]  ;;  %v499_v3 = vld [vmem:[%s609_s4 + $0x28] sm:$0xff]  ;;  %vm60_vm0 = vcmask 1040384   ;;  %vm78_vm1 = vcmask 523264  }
   0x9   :  { %90 = vmatpush.msra.mxu0 %v50_v1  ;;  %s383_s11 = sld [smem:[#allocation3 + $0x1]]  ;;  %128 = vmatpush.msra.mxu1 %v50_v1  ;;  %v47_v4 = vld [vmem:[%s609_s4 + $0x20] sm:$0xff]  ;;  %v46_v6 = vld [vmem:[%s609_s4 + $0x18] sm:$0xff]  ;;  %v45_v9 = vld [vmem:[%s609_s4 + $0x10] sm:$0xff]  ;;  %vm376_vm2 = vcmask 1024  }
   0xa   :  { %163 = vmatpush.msra.mxu2 %v50_v1  ;;  %198 = vmatpush.msra.mxu3 %v50_v1  ;;  %v508_v5 = vld [vmem:[%s606_s1] sm:$0x1]  ;;  %v44_v13 = vld [vmem:[%s609_s4 + $0x8] sm:$0xff]  ;;  %s388_s28 = sld [smem:[#allocation3 + $0x5]] }
   0xb   :  { %91 = vmatpush.msra.mxu0 %v49_v2  ;;  %129 = vmatpush.msra.mxu1 %v49_v2  ;;  %v408_v12 = vld [vmem:[%s607_s2] ss:$0 sm:$0xff]  ;;  %s385_s2 = sld [smem:[#allocation3 + $0x3]] }
   0xc   :  { %164 = vmatpush.msra.mxu2 %v49_v2  ;;  %199 = vmatpush.msra.mxu3 %v49_v2  ;;  %v43_v15 = vld [vmem:[%s609_s4] sm:$0xff]  ;;  %s384_s4 = sld [smem:[#allocation3 + $0x2]] }
   0xd   :  { %92 = vmatpush.msra.mxu0 %v499_v3  ;;  %130 = vmatpush.msra.mxu1 %v499_v3  ;;  %v542_v25 = vld [vmem:[%s608_s3] ss:$0 sm:$0xff]  ;;  %s387_s29 = sld [smem:[#allocation3 + $0x4]] }
   0xe   :  { %v52_v7 = vstv %s51_s6  ;;  %165 = vmatpush.msra.mxu2 %v499_v3  ;;  %200 = vmatpush.msra.mxu3 %v499_v3  ;;  %s391_s3 = sld [smem:[#allocation3 + $0x7]] }
   0xf   :  { %93 = vmatpush.msra.mxu0 %v47_v4  ;;  %v55_v8 = vstv %s383_s11  ;;  %131 = vmatpush.msra.mxu1 %v47_v4  ;;  %v53_v10 = vmul.f32 %v52_v7, %v508_v5  ;;  %s390_s30 = sld [smem:[#allocation3 + $0x6]] }
  0x10   :  { %v56_v11 = vmul.f32 %v55_v8, %v508_v5  ;;  %166 = vmatpush.msra.mxu2 %v47_v4  ;;  %201 = vmatpush.msra.mxu3 %v47_v4  ;;  %v111_v30 = vstv %s388_s28  ;;  %s394_s8 = sld [smem:[#allocation3 + $0x9]] }
  0x11   :  { %94 = vmatpush.msra.mxu0 %v46_v6  ;;  %132 = vmatpush.msra.mxu1 %v46_v6  ;;  %v72_v19 = vstv %s385_s2  ;;  %v112_v31 = vmul.f32 %v111_v30, %v508_v5  ;;  %s393_s9 = sld [smem:[#allocation3 + $0x8]] }
  0x12   :  { %v58_v14 = vperm.slane %v56_v11, 0  ;;  %167 = vmatpush.msra.mxu2 %v46_v6  ;;  %202 = vmatpush.msra.mxu3 %v46_v6  ;;  %v73_v20 = vmul.f32 %v72_v19, %v508_v5  ;;  %v69_v21 = vstv %s384_s4  ;;  %s397_s10 = sld [smem:[#allocation3 + $0xb]]  ;;  %v346_v19 = vld [vmem:[%s610_s5 + $0x28] sm:$0xff] }
  0x13   :  { %95 = vmatpush.msra.mxu0 %v45_v9  ;;  %133 = vmatpush.msra.mxu1 %v45_v9  ;;  %v70_v22 = vmul.f32 %v69_v21, %v508_v5  ;;  %v108_v32 = vstv %s387_s29  ;;  %v114_v34 = vperm.slane %v112_v31, 0  ;;  %s396_s6 = sld [smem:[#allocation3 + $0xa]]  ;;  %v345_v31 = vld [vmem:[%s610_s5 + $0x20] sm:$0xff] }
  0x14   :  { %v61_v16 = vsel %vm60_vm0, %v53_v10, %v58_v14  ;;  %168 = vmatpush.msra.mxu2 %v45_v9  ;;  %203 = vmatpush.msra.mxu3 %v45_v9  ;;  %v75_v23 = vperm.slane %v73_v20, 0  ;;  %v109_v33 = vmul.f32 %v108_v32, %v508_v5  ;;  %v146_v40 = vstv %s391_s3  ;;  %s400_s11 = sld [smem:[#allocation3 + $0xd]]  ;;  %v343_v32 = vld [vmem:[%s610_s5 + $0x10] sm:$0xff] }
  0x15   :  { %96 = vmatpush.msra.mxu0 %v44_v13  ;;  %v66_v17 = vadd.f32 %v408_v12, %v61_v16  ;;  %134 = vmatpush.msra.mxu1 %v44_v13  ;;  %v147_v41 = vmul.f32 %v146_v40, %v508_v5  ;;  %v143_v42 = vstv %s390_s30  ;;  %s399_s12 = sld [smem:[#allocation3 + $0xc]] }
  0x16   :  { %169 = vmatpush.msra.mxu2 %v44_v13  ;;  %204 = vmatpush.msra.mxu3 %v44_v13  ;;  %v77_v24 = vsel %vm60_vm0, %v70_v22, %v75_v23  ;;  %v116_v35 = vsel %vm60_vm0, %v109_v33, %v114_v34  ;;  %v144_v43 = vmul.f32 %v143_v42, %v508_v5  ;;  %v181_v50 = vstv %s394_s8  ;;  %s403_s0 = sld [smem:[#allocation3 + $0xf]]  ;;  %v342_v33 = vld [vmem:[%s610_s5 + $0x8] sm:$0xff]  ;;  %v341_v34 = vld [vmem:[%s610_s5] sm:$0xff] }
  0x17   :  { %97 = vmatpush.msra.mxu0 %v43_v15  ;;  %411 = vtanh.f32 %v66_v17  ;;  %135 = vmatpush.msra.mxu1 %v43_v15  ;;  %v149_v44 = vperm.slane %v147_v41, 0  ;;  %v182_v51 = vmul.f32 %v181_v50, %v508_v5  ;;  %v178_v52 = vstv %s393_s9  ;;  %v348_v17 = vld [vmem:[%s610_s5 + $0x38] sm:$0xff]  ;;  %s402_s19 = sld [smem:[#allocation3 + $0xe]] }
  0x18   :  { %170 = vmatpush.msra.mxu2 %v43_v15  ;;  %205 = vmatpush.msra.mxu3 %v43_v15  ;;  %v179_v53 = vmul.f32 %v178_v52, %v508_v5  ;;  %v216_v60 = vstv %s397_s10 }
  0x19   :  { %233 = vmatpush.msrb.mxu0 %v50_v1  ;;  %268 = vmatpush.msrb.mxu1 %v50_v1  ;;  %v151_v45 = vsel %vm60_vm0, %v144_v43, %v149_v44  ;;  %v184_v54 = vperm.slane %v182_v51, 0  ;;  %v217_v61 = vmul.f32 %v216_v60, %v508_v5  ;;  %v213_v62 = vstv %s396_s6 }
  0x1a   :  { %303 = vmatpush.msrb.mxu2 %v50_v1  ;;  %328 = vmatpush.msrb.mxu3 %v50_v1  ;;  %v214_v63 = vmul.f32 %v213_v62, %v508_v5  ;;  %v251_v7 = vstv %s400_s11 }
  0x1b   :  { %234 = vmatpush.msrb.mxu0 %v49_v2  ;;  %269 = vmatpush.msrb.mxu1 %v49_v2  ;;  %v186_v55 = vsel %vm60_vm0, %v179_v53, %v184_v54  ;;  %v219_v0 = vperm.slane %v217_v61, 0  ;;  %v252_v8 = vmul.f32 %v251_v7, %v508_v5 }
  0x1c   :  { %304 = vmatpush.msrb.mxu2 %v49_v2  ;;  %329 = vmatpush.msrb.mxu3 %v49_v2  ;;  %v286_v20 = vstv %s403_s0 }
  0x1d   :  { %v412_v18 = vpop.eup %411  ;;  %235 = vmatpush.msrb.mxu0 %v499_v3  ;;  %270 = vmatpush.msrb.mxu1 %v499_v3  ;;  %v221_v1 = vsel %vm60_vm0, %v214_v63, %v219_v0  ;;  %v254_v11 = vperm.slane %v252_v8, 0  ;;  %v287_v21 = vmul.f32 %v286_v20, %v508_v5  ;;  %v283_v22 = vstv %s402_s19 }
  0x1e   :  { %386 = vmatmul.msk.f32.vlgmr.msra.gmra.mxu0 %vm78_vm1, %v412_v18  ;;  %305 = vmatpush.msrb.mxu2 %v499_v3  ;;  %v347_v18 = vld [vmem:[%s610_s5 + $0x30] sm:$0xff]  ;;  %v284_v23 = vmul.f32 %v283_v22, %v508_v5 }
  0x1f   :  { %236 = vmatpush.msrb.mxu0 %v47_v4  ;;  %271 = vmatpush.msrb.mxu1 %v47_v4 }
  0x20   :  { %306 = vmatpush.msrb.mxu2 %v47_v4  ;;  %330 = vmatpush.msrb.mxu3 %v499_v3 }
  0x21   :  { %237 = vmatpush.msrb.mxu0 %v46_v6  ;;  %272 = vmatpush.msrb.mxu1 %v46_v6 }
  0x22   :  { %307 = vmatpush.msrb.mxu2 %v46_v6  ;;  %331 = vmatpush.msrb.mxu3 %v47_v4 }
  0x23   :  { %238 = vmatpush.msrb.mxu0 %v45_v9  ;;  %273 = vmatpush.msrb.mxu1 %v45_v9 }
  0x24   :  { %308 = vmatpush.msrb.mxu2 %v45_v9  ;;  %332 = vmatpush.msrb.mxu3 %v46_v6 }
  0x25   :  { %239 = vmatpush.msrb.mxu0 %v44_v13  ;;  %274 = vmatpush.msrb.mxu1 %v44_v13 }
  0x26   :  { %309 = vmatpush.msrb.mxu2 %v44_v13  ;;  %333 = vmatpush.msrb.mxu3 %v45_v9  ;;  %v248_v9 = vstv %s399_s12 }
  0x27   :  { %240 = vmatpush.msrb.mxu0 %v43_v15  ;;  %275 = vmatpush.msrb.mxu1 %v43_v15  ;;  %v249_v10 = vmul.f32 %v248_v9, %v508_v5  ;;  %v344_v5 = vld [vmem:[%s610_s5 + $0x18] sm:$0xff] }
  0x28   :  { %310 = vmatpush.msrb.mxu2 %v43_v15  ;;  %334 = vmatpush.msrb.mxu3 %v44_v13 }
  0x29   :  { %v256_v12 = vsel %vm60_vm0, %v249_v10, %v254_v11  ;;  %364 = vmatpush.msra.mxu0 %v348_v17 }
  0x2a   :  { %335 = vmatpush.msrb.mxu3 %v43_v15 }
  0x2b   :  { %365 = vmatpush.msra.mxu0 %v347_v18 }
  0x2d   :  { %366 = vmatpush.msra.mxu0 %v346_v19 }
  0x2f   :  { %367 = vmatpush.msra.mxu0 %v345_v31 }
  0x31   :  { %368 = vmatpush.msra.mxu0 %v344_v5 }
  0x33   :  { %369 = vmatpush.msra.mxu0 %v343_v32 }
  0x35   :  { %370 = vmatpush.msra.mxu0 %v342_v33 }
  0x37   :  { %371 = vmatpush.msra.mxu0 %v341_v34 }
  0x9b   :  { %v99_v26 = vpop.f32.mrf.mxu0 }
  0x9c   :  { %v100_v27 = vadd.f32 %v99_v26, %v77_v24  ;;  %v289_v24 = vperm.slane %v287_v21, 0 }
  0x9e   :  { %v105_v28 = vadd.f32 %v542_v25, %v100_v27  ;;  %v291_v26 = vsel %vm60_vm0, %v284_v23, %v289_v24 }
  0xa0   :  { %413 = vtanh.f32 %v105_v28 }
  0xa6   :  { %v414_v29 = vpop.eup %413 }
  0xa7   :  { %389 = vmatmul.msk.f32.vlgmr.msra.gmra.mxu1 %vm78_vm1, %v414_v29 }
 0x124   :  { %v137_v36 = vpop.f32.mrf.mxu1 }
 0x125   :  { %v138_v37 = vadd.f32 %v137_v36, %v116_v35 }
 0x127   :  { %v140_v38 = vadd.f32 %v542_v25, %v138_v37 }
 0x129   :  { %415 = vtanh.f32 %v140_v38  ;;  %v410_v38 = vld [vmem:[#allocation2] ss:$0 sm:$0xff] }
 0x12f   :  { %v416_v39 = vpop.eup %415 }
 0x130   :  { %392 = vmatmul.msk.f32.vlgmr.msra.gmra.mxu2 %vm78_vm1, %v416_v39 }
 0x1b3   :  { %v172_v46 = vpop.f32.mrf.mxu2 }
 0x1b4   :  { %v173_v47 = vadd.f32 %v172_v46, %v151_v45 }
 0x1b6   :  { %v175_v48 = vadd.f32 %v542_v25, %v173_v47 }
 0x1b8   :  { %417 = vtanh.f32 %v175_v48 }
 0x1be   :  { %v418_v49 = vpop.eup %417 }
 0x1bf   :  { %395 = vmatmul.msk.f32.vlgmr.msra.gmra.mxu3 %vm78_vm1, %v418_v49 }
 0x242   :  { %v207_v56 = vpop.f32.mrf.mxu3 }
 0x243   :  { %v208_v57 = vadd.f32 %v207_v56, %v186_v55 }
 0x245   :  { %v210_v58 = vadd.f32 %v542_v25, %v208_v57 }
 0x247   :  { %419 = vtanh.f32 %v210_v58 }
 0x24d   :  { %v420_v59 = vpop.eup %419 }
 0x24e   :  { %398 = vmatmul.msk.f32.vlgmr.msrb.gmra.mxu0 %vm78_vm1, %v420_v59 }
 0x2cb   :  { %v242_v2 = vpop.f32.mrf.mxu0 }
 0x2cc   :  { %v243_v3 = vadd.f32 %v242_v2, %v221_v1 }
 0x2ce   :  { %v245_v4 = vadd.f32 %v542_v25, %v243_v3 }
 0x2d0   :  { %421 = vtanh.f32 %v245_v4 }
 0x2d6   :  { %v422_v6 = vpop.eup %421 }
 0x2d7   :  { %401 = vmatmul.msk.f32.vlgmr.msrb.gmra.mxu1 %vm78_vm1, %v422_v6 }
 0x354   :  { %v277_v13 = vpop.f32.mrf.mxu1 }
 0x355   :  { %v278_v14 = vadd.f32 %v277_v13, %v256_v12 }
 0x357   :  { %v280_v15 = vadd.f32 %v542_v25, %v278_v14 }
 0x359   :  { %423 = vtanh.f32 %v280_v15 }
 0x35f   :  { %v424_v16 = vpop.eup %423 }
 0x360   :  { %404 = vmatmul.msk.f32.vlgmr.msrb.gmra.mxu2 %vm78_vm1, %v424_v16 }
 0x3e3   :  { %v312_v27 = vpop.f32.mrf.mxu2 }
 0x3e4   :  { %v313_v28 = vadd.f32 %v312_v27, %v291_v26 }
 0x3e6   :  { %v315_v29 = vadd.f32 %v542_v25, %v313_v28 }
 0x3e8   :  { %425 = vtanh.f32 %v315_v29 }
 0x3ee   :  { %v426_v30 = vpop.eup %425 }
 0x3ef   :  { %405 = vmatmul.msk.f32.vlgmr.msrb.gmra.mxu3 %vm78_vm1, %v426_v30 }
 0x472   :  { %v337_v35 = vpop.f32.mrf.mxu3 }
 0x473   :  { %v338_v36 = vadd.f32 %v542_v25, %v337_v35 }
 0x475   :  { %427 = vtanh.f32 %v338_v36 }
 0x47b   :  { %v428_v37 = vpop.eup %427 }
 0x47c   :  { %406 = vmatmul.msk.f32.vlgmr.msra.gmra.mxu0 %vm78_vm1, %v428_v37 }
 0x4f9   :  { %v373_v39 = vpop.f32.mrf.mxu0 }
 0x4fa   :  { %v374_v40 = vadd.f32 %v410_v38, %v373_v39 }
 0x4fc   :  { %377 = vst.msk [vmem:[%s612_s7] sm:$0x3] %vm376_vm2, %v374_v40 }
 0x4fd   :  { %382 = vsyncpa [#allocation4], 1 }

</bundles_post_ra>
